<compile_context>
chip_gen: v7x
topology: tpu7x:2x2x1
jax: 0.10.0
libtpu: 0.0.40
codegen_flags: <defaults>
</compile_context>

<pallas_src>
import jax
import jax.numpy as jnp
from jax import lax
from jax.experimental import pallas as pl
from jax.experimental.pallas import tpu as pltpu

# ---------------------------------------------------------------------------
# sizes (small, synthetic)
# ---------------------------------------------------------------------------
EMB = 32
NUM_USERS = 16
NUM_ITEMS = 32
NUM_BUNDLES = 16
N_NODES = NUM_USERS + NUM_ITEMS + NUM_BUNDLES      # 64
BATCH = 2
NB = 4                                             # bundles per user in a batch
L2_NORM = 1e-4


# ---------------------------------------------------------------------------
# fused kernel: propagate + one-hot gathers + predict + score-bound + L2 sum
# everything is held in transposed (E, N) layout so the final reductions are
# sublane reduces and the outputs are lane-dense row vectors.
# ---------------------------------------------------------------------------
def uhbr_kernel(uidx_ref, ridx_ref, bidx_ref,        # (1,b)/(1,bn)/(1,bn) int32
                ht_ref, e0t_ref, w_ref,              # (N,N) H^T, (E,N) e0^T, (E,1) bound
                pred_ref, bound_ref, sq_ref):        # (1,bn), (1,b), (1,1)
    n = ht_ref.shape[0]
    b = uidx_ref.shape[1]
    bn = ridx_ref.shape[1]

    # --- propagate (transposed): all^T = e0^T/2 + (e0^T @ H^T)/3 ------------
    # dropout == identity (eval mode)
    e0t = e0t_ref[...]                                                  # (E, N)
    e1t = jnp.dot(e0t, ht_ref[...], preferred_element_type=jnp.float32)
    allt = e0t * 0.5 + e1t * (1.0 / 3.0)                                # (E, N)

    # --- regularize: sum of squares over all propagated features ------------
    sq_ref[...] = jnp.sum(allt * allt, keepdims=True)                   # (1, 1)

    # --- vectorized gathers: one-hot column selectors on the MXU ------------
    row_bn = lax.broadcasted_iota(jnp.int32, (n, bn), 0)
    row_b = lax.broadcasted_iota(jnp.int32, (n, b), 0)
    rep_oh = (row_bn == ridx_ref[...]).astype(jnp.float32)              # (N, bn)
    bnd_oh = (row_bn == bidx_ref[...]).astype(jnp.float32)              # (N, bn)
    usr_oh = (row_b == uidx_ref[...]).astype(jnp.float32)               # (N, b)

    urep_t = jnp.dot(allt, rep_oh, preferred_element_type=jnp.float32)  # (E, bn)
    bndl_t = jnp.dot(allt, bnd_oh, preferred_element_type=jnp.float32)  # (E, bn)
    user_t = jnp.dot(allt, usr_oh, preferred_element_type=jnp.float32)  # (E, b)

    # --- predict: sum(users_emb * bundles_emb, -1) -> lane-dense (1, bn) ----
    pred_ref[...] = jnp.sum(urep_t * bndl_t, axis=0, keepdims=True)

    # --- user_score_bound: users_feature[users] @ user_bound -> (1, b) ------
    bound_ref[...] = jnp.sum(user_t * w_ref[...], axis=0, keepdims=True)


def uhbr_fused(h_t, embed_0_t, user_bound, users_idx_row, rep_idx_row,
               bundles_idx_row):
    e, n = embed_0_t.shape
    b = users_idx_row.shape[1]
    bn = bundles_idx_row.shape[1]
    return pl.pallas_call(
        uhbr_kernel,
        out_shape=(jax.ShapeDtypeStruct((1, bn), jnp.float32),   # pred (flat row)
                   jax.ShapeDtypeStruct((1, b), jnp.float32),    # score bound
                   jax.ShapeDtypeStruct((1, 1), jnp.float32)),   # sum of squares
        grid_spec=pltpu.PrefetchScalarGridSpec(
            num_scalar_prefetch=0,
            grid=(1,),
            in_specs=[
                pl.BlockSpec((1, b), lambda i: (0, 0)),     # user indices
                pl.BlockSpec((1, bn), lambda i: (0, 0)),    # replicated user indices
                pl.BlockSpec((1, bn), lambda i: (0, 0)),    # bundle indices (offset)
                pl.BlockSpec((n, n), lambda i: (0, 0)),     # H_norm^T
                pl.BlockSpec((e, n), lambda i: (0, 0)),     # embed_0^T
                pl.BlockSpec((e, 1), lambda i: (0, 0)),     # user_bound column
            ],
            out_specs=[
                pl.BlockSpec((1, bn), lambda i: (0, 0)),
                pl.BlockSpec((1, b), lambda i: (0, 0)),
                pl.BlockSpec((1, 1), lambda i: (0, 0)),
            ],
        ),
        compiler_params=pltpu.CompilerParams(
            dimension_semantics=("arbitrary",)),
    )(users_idx_row, rep_idx_row, bundles_idx_row, h_t, embed_0_t, user_bound)


# ---------------------------------------------------------------------------
# glue: parameter init, synthetic normalized hypergraph, full forward
# ---------------------------------------------------------------------------
def init_params(key, emb=EMB):
    ku, ki, kb, kw = jax.random.split(key, 4)
    std = 0.5 / emb
    return {
        "users":   jax.random.normal(ku, (NUM_USERS, emb), jnp.float32) * std,
        "items":   jax.random.normal(ki, (NUM_ITEMS, emb), jnp.float32) * std,
        "bundles": jax.random.normal(kb, (NUM_BUNDLES, emb), jnp.float32) * std,
        "user_bound": jax.random.normal(kw, (emb, 1), jnp.float32) * std,
    }


def make_normalized_hypergraph(key, n_nodes, n_edges=64):
    # synthetic dense incidence matrix standing in for mix_hypergraph(...)
    H = (jax.random.uniform(key, (n_nodes, n_edges)) < 0.2).astype(jnp.float32)
    H = H + jnp.eye(n_nodes, n_edges, dtype=jnp.float32)      # keep degrees > 0
    dv = 1.0 / (jnp.sqrt(H.sum(axis=1)) + 1e-8)
    de = 1.0 / (jnp.sqrt(H.sum(axis=0)) + 1e-8)
    X = H * dv[:, None]                                       # D_v @ H
    return (X * de[None, :]) @ X.T                            # D_v H D_e H^T D_v


def uhbr_forward(params, h_norm, users, bundles, l2_norm=L2_NORM):
    B, nb = bundles.shape
    embed_0 = jnp.concatenate(
        [params["users"], params["items"], params["bundles"]], axis=0)   # (N, E)

    # row indices into all_embeds (bundles live after users+items)
    users_idx = users[:, 0].astype(jnp.int32)                            # (B,)
    rep_idx = jnp.repeat(users_idx, nb)                                  # (B*nb,)
    bundles_idx = (bundles.reshape(-1) + NUM_USERS + NUM_ITEMS).astype(jnp.int32)

    pred_row, bound_row, sumsq = uhbr_fused(
        h_norm.T,                      # kernel consumes H^T (symmetric anyway)
        embed_0.T,                     # (E, N)
        params["user_bound"],          # (E, 1)
        users_idx[None, :],            # (1, B)
        rep_idx[None, :],              # (1, B*nb)
        bundles_idx[None, :],          # (1, B*nb)
    )

    pred = pred_row.reshape(B, nb)
    user_score_bound = bound_row.reshape(B, 1, 1)
    loss = l2_norm * sumsq[0, 0]
    return pred, user_score_bound, loss


# ---------------------------------------------------------------------------
if __name__ == "__main__":
    key = jax.random.PRNGKey(0)
    k_param, k_graph, k_u, k_b = jax.random.split(key, 4)

    params = init_params(k_param)
    h_norm = make_normalized_hypergraph(k_graph, N_NODES)

    users = jax.random.randint(k_u, (BATCH, 1), 0, NUM_USERS, dtype=jnp.int32)
    bundles = jax.random.randint(k_b, (BATCH, NB), 0, NUM_BUNDLES, dtype=jnp.int32)

    pred, user_score_bound, loss = jax.jit(uhbr_forward)(params, h_norm, users, bundles)
    jax.block_until_ready((pred, user_score_bound, loss))

    # lightweight sanity check against a pure-JAX reference
    embed_0 = jnp.concatenate([params["users"], params["items"], params["bundles"]], 0)
    all_ref = embed_0 / 2 + (h_norm @ embed_0) / 3
    uf, bf = all_ref[:NUM_USERS], all_ref[NUM_USERS + NUM_ITEMS:]
    pred_ref = jnp.sum(uf[users[:, 0]][:, None, :] * bf[bundles], axis=2)
    bound_ref = (uf[users[:, 0]] @ params["user_bound"]).reshape(BATCH, 1, 1)
    loss_ref = L2_NORM * jnp.sum(all_ref ** 2)
    assert jnp.allclose(pred, pred_ref, atol=1e-5), "pred mismatch"
    assert jnp.allclose(user_score_bound, bound_ref, atol=1e-5), "bound mismatch"
    assert jnp.allclose(loss, loss_ref, atol=1e-5), "loss mismatch"

    print("KERNEL_OK")
</pallas_src>

<mosaic_0001>
module attributes {stable_mosaic.version = 11 : i64} {
  func.func @uhbr_kernel(%arg0: i32, %arg1: memref<1x2xi32, #tpu.memory_space<vmem>>, %arg2: memref<1x8xi32, #tpu.memory_space<vmem>>, %arg3: memref<1x8xi32, #tpu.memory_space<vmem>>, %arg4: memref<64x64xf32, #tpu.memory_space<vmem>>, %arg5: memref<32x64xf32, #tpu.memory_space<vmem>>, %arg6: memref<32x1xf32, #tpu.memory_space<vmem>>, %arg7: memref<1x8xf32, #tpu.memory_space<vmem>>, %arg8: memref<1x2xf32, #tpu.memory_space<vmem>>, %arg9: memref<1x1xf32, #tpu.memory_space<vmem>>) attributes {dimension_semantics = [#tpu.dimension_semantics<arbitrary>], iteration_bounds = array<i64: 1>, scalar_prefetch = 0 : i64, scratch_operands = 0 : i64, tpu.core_type = #tpu.core_type<tc>, window_params = [{pipeline_mode = #tpu.pipeline_mode<synchronous>, transform_indices = @transform_0, window_bounds = array<i64: 1, 2>}, {pipeline_mode = #tpu.pipeline_mode<synchronous>, transform_indices = @transform_1, window_bounds = array<i64: 1, 8>}, {pipeline_mode = #tpu.pipeline_mode<synchronous>, transform_indices = @transform_2, window_bounds = array<i64: 1, 8>}, {pipeline_mode = #tpu.pipeline_mode<synchronous>, transform_indices = @transform_3, window_bounds = array<i64: 64, 64>}, {pipeline_mode = #tpu.pipeline_mode<synchronous>, transform_indices = @transform_4, window_bounds = array<i64: 32, 64>}, {pipeline_mode = #tpu.pipeline_mode<synchronous>, transform_indices = @transform_5, window_bounds = array<i64: 32, 1>}, {pipeline_mode = #tpu.pipeline_mode<synchronous>, transform_indices = @transform_6, window_bounds = array<i64: 1, 8>}, {pipeline_mode = #tpu.pipeline_mode<synchronous>, transform_indices = @transform_7, window_bounds = array<i64: 1, 2>}, {pipeline_mode = #tpu.pipeline_mode<synchronous>, transform_indices = @transform_8, window_bounds = array<i64: 1, 1>}]} {
    %c0 = arith.constant 0 : index
    %c0_0 = arith.constant 0 : index
    %0 = vector.load %arg5[%c0, %c0_0] : memref<32x64xf32, #tpu.memory_space<vmem>>, vector<32x64xf32>
    %c0_1 = arith.constant 0 : index
    %c0_2 = arith.constant 0 : index
    %1 = vector.load %arg4[%c0_1, %c0_2] : memref<64x64xf32, #tpu.memory_space<vmem>>, vector<64x64xf32>
    %cst = arith.constant dense<0.000000e+00> : vector<32x64xf32>
    %2 = tpu.matmul %0, %1, %cst {dimension_numbers = #tpu.dot_dimension_numbers<[1], [0], [0], [1], [0, 0, 1, 1], [], []>} : vector<32x64xf32>, vector<64x64xf32>, vector<32x64xf32> -> vector<32x64xf32>
    %cst_3 = arith.constant 5.000000e-01 : f32
    %3 = vector.broadcast %cst_3 : f32 to vector<32x64xf32>
    %4 = arith.mulf %0, %3 : vector<32x64xf32>
    %cst_4 = arith.constant 0.333333343 : f32
    %5 = vector.broadcast %cst_4 : f32 to vector<32x64xf32>
    %6 = arith.mulf %2, %5 : vector<32x64xf32>
    %7 = arith.addf %4, %6 : vector<32x64xf32>
    %8 = arith.mulf %7, %7 : vector<32x64xf32>
    %9 = vector.shape_cast %8 : vector<32x64xf32> to vector<1x32x64xf32>
    %cst_5 = arith.constant dense<0.000000e+00> : vector<1xf32>
    %10 = vector.multi_reduction <add>, %9, %cst_5 [1, 2] : vector<1x32x64xf32> to vector<1xf32>
    %11 = vector.shape_cast %10 : vector<1xf32> to vector<1x1x1xf32>
    %12 = vector.extract %11[0, 0, 0] : f32 from vector<1x1x1xf32>
    %13 = vector.broadcast %12 : f32 to vector<1x1xf32>
    %c0_6 = arith.constant 0 : index
    %c0_7 = arith.constant 0 : index
    %14 = vector.load %arg9[%c0_6, %c0_7] : memref<1x1xf32, #tpu.memory_space<vmem>>, vector<1x1xf32>
    tpu.vector_store %arg9[%c0_6, %c0_7], %13 {strides = array<i32>} : memref<1x1xf32, #tpu.memory_space<vmem>>, vector<1x1xf32>,
    %15 = tpu.iota {dimensions = array<i32: 0>} : vector<64x8xi32>
    %16 = tpu.iota {dimensions = array<i32: 0>} : vector<64x2xi32>
    %c0_8 = arith.constant 0 : index
    %c0_9 = arith.constant 0 : index
    %17 = vector.load %arg2[%c0_8, %c0_9] : memref<1x8xi32, #tpu.memory_space<vmem>>, vector<1x8xi32>
    %18 = vector.broadcast %17 : vector<1x8xi32> to vector<64x8xi32>
    %19 = arith.cmpi eq, %15, %18 : vector<64x8xi32>
    %20 = arith.extui %19 : vector<64x8xi1> to vector<64x8xi32>
    %21 = arith.sitofp %20 : vector<64x8xi32> to vector<64x8xf32>
    %c0_10 = arith.constant 0 : index
    %c0_11 = arith.constant 0 : index
    %22 = vector.load %arg3[%c0_10, %c0_11] : memref<1x8xi32, #tpu.memory_space<vmem>>, vector<1x8xi32>
    %23 = vector.broadcast %22 : vector<1x8xi32> to vector<64x8xi32>
    %24 = arith.cmpi eq, %15, %23 : vector<64x8xi32>
    %25 = arith.extui %24 : vector<64x8xi1> to vector<64x8xi32>
    %26 = arith.sitofp %25 : vector<64x8xi32> to vector<64x8xf32>
    %c0_12 = arith.constant 0 : index
    %c0_13 = arith.constant 0 : index
    %27 = vector.load %arg1[%c0_12, %c0_13] : memref<1x2xi32, #tpu.memory_space<vmem>>, vector<1x2xi32>
    %28 = vector.broadcast %27 : vector<1x2xi32> to vector<64x2xi32>
    %29 = arith.cmpi eq, %16, %28 : vector<64x2xi32>
    %30 = arith.extui %29 : vector<64x2xi1> to vector<64x2xi32>
    %31 = arith.sitofp %30 : vector<64x2xi32> to vector<64x2xf32>
    %cst_14 = arith.constant dense<0.000000e+00> : vector<32x8xf32>
    %32 = tpu.matmul %7, %21, %cst_14 {dimension_numbers = #tpu.dot_dimension_numbers<[1], [0], [0], [1], [0, 0, 1, 1], [], []>} : vector<32x64xf32>, vector<64x8xf32>, vector<32x8xf32> -> vector<32x8xf32>
    %cst_15 = arith.constant dense<0.000000e+00> : vector<32x8xf32>
    %33 = tpu.matmul %7, %26, %cst_15 {dimension_numbers = #tpu.dot_dimension_numbers<[1], [0], [0], [1], [0, 0, 1, 1], [], []>} : vector<32x64xf32>, vector<64x8xf32>, vector<32x8xf32> -> vector<32x8xf32>
    %cst_16 = arith.constant dense<0.000000e+00> : vector<32x2xf32>
    %34 = tpu.matmul %7, %31, %cst_16 {dimension_numbers = #tpu.dot_dimension_numbers<[1], [0], [0], [1], [0, 0, 1, 1], [], []>} : vector<32x64xf32>, vector<64x2xf32>, vector<32x2xf32> -> vector<32x2xf32>
    %35 = arith.mulf %32, %33 : vector<32x8xf32>
    %cst_17 = arith.constant dense<0.000000e+00> : vector<8xf32>
    %36 = vector.multi_reduction <add>, %35, %cst_17 [0] : vector<32x8xf32> to vector<8xf32>
    %37 = vector.shape_cast %36 : vector<8xf32> to vector<1x8xf32>
    %c0_18 = arith.constant 0 : index
    %c0_19 = arith.constant 0 : index
    %38 = vector.load %arg7[%c0_18, %c0_19] : memref<1x8xf32, #tpu.memory_space<vmem>>, vector<1x8xf32>
    tpu.vector_store %arg7[%c0_18, %c0_19], %37 {strides = array<i32>} : memref<1x8xf32, #tpu.memory_space<vmem>>, vector<1x8xf32>,
    %c0_20 = arith.constant 0 : index
    %c0_21 = arith.constant 0 : index
    %39 = vector.load %arg6[%c0_20, %c0_21] : memref<32x1xf32, #tpu.memory_space<vmem>>, vector<32x1xf32>
    %40 = vector.broadcast %39 : vector<32x1xf32> to vector<32x2xf32>
    %41 = arith.mulf %34, %40 : vector<32x2xf32>
    %cst_22 = arith.constant dense<0.000000e+00> : vector<2xf32>
    %42 = vector.multi_reduction <add>, %41, %cst_22 [0] : vector<32x2xf32> to vector<2xf32>
    %43 = vector.shape_cast %42 : vector<2xf32> to vector<1x2xf32>
    %c0_23 = arith.constant 0 : index
    %c0_24 = arith.constant 0 : index
    %44 = vector.load %arg8[%c0_23, %c0_24] : memref<1x2xf32, #tpu.memory_space<vmem>>, vector<1x2xf32>
    tpu.vector_store %arg8[%c0_23, %c0_24], %43 {strides = array<i32>} : memref<1x2xf32, #tpu.memory_space<vmem>>, vector<1x2xf32>,
    return
  }
  func.func @transform_0(%arg0: i32) -> (i32, i32) {
    %c0_i32 = arith.constant 0 : i32
    %c0_i32_0 = arith.constant 0 : i32
    %c0_i32_1 = arith.constant 0 : i32
    return %c0_i32, %c0_i32_0 : i32, i32
  }
  func.func @transform_1(%arg0: i32) -> (i32, i32) {
    %c0_i32 = arith.constant 0 : i32
    %c0_i32_0 = arith.constant 0 : i32
    %c0_i32_1 = arith.constant 0 : i32
    return %c0_i32, %c0_i32_0 : i32, i32
  }
  func.func @transform_2(%arg0: i32) -> (i32, i32) {
    %c0_i32 = arith.constant 0 : i32
    %c0_i32_0 = arith.constant 0 : i32
    %c0_i32_1 = arith.constant 0 : i32
    return %c0_i32, %c0_i32_0 : i32, i32
  }
  func.func @transform_3(%arg0: i32) -> (i32, i32) {
    %c0_i32 = arith.constant 0 : i32
    %c0_i32_0 = arith.constant 0 : i32
    %c0_i32_1 = arith.constant 0 : i32
    return %c0_i32, %c0_i32_0 : i32, i32
  }
  func.func @transform_4(%arg0: i32) -> (i32, i32) {
    %c0_i32 = arith.constant 0 : i32
    %c0_i32_0 = arith.constant 0 : i32
    %c0_i32_1 = arith.constant 0 : i32
    return %c0_i32, %c0_i32_0 : i32, i32
  }
  func.func @transform_5(%arg0: i32) -> (i32, i32) {
    %c0_i32 = arith.constant 0 : i32
    %c0_i32_0 = arith.constant 0 : i32
    %c0_i32_1 = arith.constant 0 : i32
    return %c0_i32, %c0_i32_0 : i32, i32
  }
  func.func @transform_6(%arg0: i32) -> (i32, i32) {
    %c0_i32 = arith.constant 0 : i32
    %c0_i32_0 = arith.constant 0 : i32
    %c0_i32_1 = arith.constant 0 : i32
    return %c0_i32, %c0_i32_0 : i32, i32
  }
  func.func @transform_7(%arg0: i32) -> (i32, i32) {
    %c0_i32 = arith.constant 0 : i32
    %c0_i32_0 = arith.constant 0 : i32
    %c0_i32_1 = arith.constant 0 : i32
    return %c0_i32, %c0_i32_0 : i32, i32
  }
  func.func @transform_8(%arg0: i32) -> (i32, i32) {
    %c0_i32 = arith.constant 0 : i32
    %c0_i32_0 = arith.constant 0 : i32
    %c0_i32_1 = arith.constant 0 : i32
    return %c0_i32, %c0_i32_0 : i32, i32
  }
}

</mosaic_0001>

<bundles_post_ra>
// kernel: uhbr_forward.1
= control target key start
LH: loop header
LB: loop body
LE: loop exit
PB: predicated region body
PF: predicated region fallthrough
CT: control target
= control target key end

     0   :  { %14 = vsyncpa [#allocation3], 0  ;;  %vm40_vm0 = vcmask 523264   ;;  %v173_v3 = vlaneseq  ;;  %s1205_s0 = inlined_call_operand.vmem [shape: s32[1,2], index: 0, kind: input, shape index: {}]   ;;  %s1206_s1 = inlined_call_operand.vmem [shape: s32[1,8], index: 1, kind: input, shape index: {}]   ;;  %s1207_s2 = inlined_call_operand.vmem [shape: s32[1,8], index: 2, kind: input, shape index: {}]   ;;  %s1208_s3 = inlined_call_operand.vmem [shape: f32[64,64], index: 3, kind: input, shape index: {}]   ;;  %s1209_s4 = inlined_call_operand.vmem [shape: f32[32,64], index: 4, kind: input, shape index: {}]   ;;  %s1210_s5 = inlined_call_operand.vmem [shape: f32[32,1], index: 5, kind: input, shape index: {}]   ;;  %s1211_s6 = inlined_call_operand.vmem [shape: f32[1,8], index: 6, kind: output, shape index: {0}]   ;;  %s1212_s7 = inlined_call_operand.hbm [shape: f32[1,2], index: 7, kind: output, shape index: {1}]   ;;  %s1213_s8 = inlined_call_operand.hbm [shape: f32[1,1], index: 8, kind: output, shape index: {2}]  }
   0x1   :  { %v32_v0 = vld [vmem:[%s1208_s3] sm:$0xff]  ;;  %v33_v1 = vld [vmem:[%s1208_s3 + $0x8] sm:$0xff]  ;;  %v34_v2 = vld [vmem:[%s1208_s3 + $0x10] sm:$0xff] }
   0x2   :  { %v835_v4 = vpack.c.bf16 %v33_v1, %v32_v0  ;;  %v35_v5 = vld [vmem:[%s1208_s3 + $0x18] sm:$0xff]  ;;  %v36_v7 = vld [vmem:[%s1208_s3 + $0x20] sm:$0xff]  ;;  %v37_v8 = vld [vmem:[%s1208_s3 + $0x28] sm:$0xff]  ;;  %v1027_v10 = vshrl.u32 %v173_v3, 7 }
   0x3   :  { %v839_v6 = vpack.c.bf16 %v35_v5, %v34_v2  ;;  %v1025_v9 = vld [vmem:[%s1209_s4] sm:$0xff]  ;;  %v843_v14 = vpack.c.bf16 %v37_v8, %v36_v7 }
   0x4   :  { %836 = vmatprep.subr.bf16.mxu0 %v835_v4  ;;  %763 = vmatprep.mubr.msk.f32.mxu0 %vm40_vm0, %v1025_v9  ;;  %v1032_v11 = vadd.s32 8, %v1027_v10  ;;  %v636_v12 = vld [vmem:[%s1206_s1] ss:$0 sm:$0xff]  ;;  %v1038_v13 = vadd.s32 16, %v1027_v10  ;;  %v1042_v15 = vadd.s32 24, %v1027_v10  ;;  %v1045_v16 = vadd.s32 32, %v1027_v10 }
   0x5   :  { %838 = vmatpush3.bf16.msra.mxu0 %v835_v4  ;;  %vm187_vm1 = vcmp.eq.s32.totalorder %v1027_v10, %v636_v12 }
   0x6   :  { %840 = vmatprep.subr.bf16.mxu0 %v839_v6 }
   0x7   :  { %15 = vsyncpa [#allocation5], 0  ;;  %v38_v17 = vld [vmem:[%s1208_s3 + $0x30] sm:$0xff]  ;;  %v39_v18 = vld [vmem:[%s1208_s3 + $0x38] sm:$0xff]  ;;  %vm188_vm2 = vcmp.eq.s32.totalorder %v1032_v11, %v636_v12  ;;  %vm189_vm3 = vcmp.eq.s32.totalorder %v1038_v13, %v636_v12  ;;  %vm190_vm5 = vcmp.eq.s32.totalorder %v1042_v15, %v636_v12  ;;  %v1057_v19 = vadd.s32 40, %v1027_v10  ;;  %s957_s16 = smov [#allocation4]  }
   0x8   :  { %vm851_vm4 = vmpackc.low %vm188_vm2, %vm187_vm1  ;;  %v955_v20 = vmov 1.0|1.0   ;;  %v645_v21 = vld [vmem:[%s1207_s2] ss:$0 sm:$0xff]  ;;  %vm191_vm6 = vcmp.eq.s32.totalorder %v1045_v16, %v636_v12  ;;  %v847_v22 = vpack.c.bf16 %v39_v18, %v38_v17  ;;  %v29_v23 = vld [vmem:[%s1209_s4 + $0x8] sm:$0xff]  ;;  %v180_v26 = vadd.s32 48, %v1027_v10 }
   0x9   :  { %842 = vmatpush3.bf16.msra.mxu0 %v839_v6  ;;  %852 = vmatprep.subr.msk.bf16.mxu1 %vm851_vm4, %v955_v20  ;;  %vm855_vm7 = vmpackc.low %vm190_vm5, %vm189_vm3  ;;  %vm192_vm8 = vcmp.eq.s32.totalorder %v1057_v19, %v636_v12  ;;  %vm216_vm9 = vcmp.eq.s32.totalorder %v1027_v10, %v645_v21  ;;  %vm217_vm10 = vcmp.eq.s32.totalorder %v1032_v11, %v645_v21  ;;  %v30_v24 = vld [vmem:[%s1209_s4 + $0x10] sm:$0xff]  ;;  %v31_v25 = vld [vmem:[%s1209_s4 + $0x18] sm:$0xff]  ;;  %v181_v27 = vadd.s32 56, %v1027_v10  ;;  %s618_s17 = sshll.u32 %s957_s16, 4  ;;  %s619_s17 = int_to_ptr.vmem [resolvable:$true] %s618_s17 }
   0xa   :  { %844 = vmatprep.subr.bf16.mxu0 %v843_v14  ;;  %854 = vmatpush3.bf16.msk.msra.mxu1 %vm851_vm4, %v955_v20  ;;  %vm859_vm11 = vmpackc.low %vm192_vm8, %vm191_vm6  ;;  %vm218_vm13 = vcmp.eq.s32.totalorder %v1038_v13, %v645_v21  ;;  %vm219_vm14 = vcmp.eq.s32.totalorder %v1042_v15, %v645_v21  ;;  %vm220_vm1 = vcmp.eq.s32.totalorder %v1045_v16, %v645_v21  ;;  %v654_v28 = vld [vmem:[%s1205_s0] ss:$0 sm:$0xff]  ;;  %v557_v31 = vld [vmem:[%s1210_s5 + $0x8] sm:$0xff]  ;;  %v956_v32 = vmov 0   ;;  %s907_s18 = scalar_lea.vmem %s619_s17, 16  ;;  %s911_s19 = scalar_lea.vmem %s619_s17, 32 }
   0xb   :  { %856 = vmatprep.subr.msk.bf16.mxu1 %vm855_vm7, %v955_v20  ;;  %vm867_vm12 = vmpackc.low %vm217_vm10, %vm216_vm9  ;;  %vm221_vm2 = vcmp.eq.s32.totalorder %v1057_v19, %v645_v21  ;;  %vm193_vm4 = vcmp.eq.s32.totalorder %v180_v26, %v636_v12  ;;  %vm194_vm5 = vcmp.eq.s32.totalorder %v181_v27, %v636_v12  ;;  %vm223_vm8 = vcmp.eq.s32.totalorder %v181_v27, %v645_v21  ;;  %v558_v33 = vld [vmem:[%s1210_s5 + $0x10] sm:$0xff]  ;;  %v559_v34 = vld [vmem:[%s1210_s5 + $0x18] sm:$0xff]  ;;  %p908_p0 = scmp.ne.s32.totalorder %s619_s17, %s907_s18  ;;  %p912_p1 = scmp.lt.s32.totalorder %s619_s17, %s619_s17 }
   0xc   :  { %vm871_vm15 = vmpackc.low %vm219_vm14, %vm218_vm13  ;;  %vm245_vm10 = vcmp.eq.s32.totalorder %v1027_v10, %v654_v28  ;;  %vm251_vm13 = vcmp.eq.s32.totalorder %v180_v26, %v654_v28  ;;  %vm252_vm14 = vcmp.eq.s32.totalorder %v181_v27, %v654_v28  ;;  %906 = vset.pattern.permute.xlu1 %v956_v32  ;;  %905 = vset.pattern.permute.xlu0 %v956_v32  ;;  %v139_v35 = vmul.f32 0.5, %v29_v23  ;;  %v556_v63 = vld [vmem:[%s1210_s5] sm:$0xff]  ;;  %p913_p2 = scmp.lt.s32.totalorder %s911_s19, %s907_s18 }
   0xd   :  { %846 = vmatpush3.bf16.msra.mxu0 %v843_v14  ;;  %vm875_vm3 = vmpackc.low %vm221_vm2, %vm220_vm1  ;;  %567 = vperm.xlu1 %906, %v557_v31   ;;  %v138_v36 = vmul.f32 0.5, %v1025_v9  ;;  %v141_v42 = vmul.f32 0.5, %v31_v25  ;;  %vm247_vm1 = vcmp.eq.s32.totalorder %v1038_v13, %v654_v28  ;;  %vm248_vm2 = vcmp.eq.s32.totalorder %v1042_v15, %v654_v28 }
   0xe   :  { %848 = vmatprep.subr.bf16.mxu0 %v847_v22  ;;  %858 = vmatpush3.bf16.msk.msra.mxu1 %vm855_vm7, %v955_v20  ;;  %vm863_vm6 = vmpackc.low %vm194_vm5, %vm193_vm4  ;;  %vm222_vm7 = vcmp.eq.s32.totalorder %v180_v26, %v645_v21  ;;  %v140_v45 = vmul.f32 0.5, %v30_v24  ;;  %vm249_vm4 = vcmp.eq.s32.totalorder %v1045_v16, %v654_v28  ;;  %vm250_vm5 = vcmp.eq.s32.totalorder %v1057_v19, %v654_v28  ;;  %p914_p3 = por %p913_p2, %p912_p1 }
   0xf   :  { %860 = vmatprep.subr.msk.bf16.mxu1 %vm859_vm11, %v955_v20  ;;  %vm879_vm9 = vmpackc.low %vm223_vm8, %vm222_vm7  ;;  %vm540_vm7 = vcmask 64512  }
  0x10   :  { %p915_p4 = pnand %p914_p3, %p908_p0 }
  0x11   :  { %850 = vmatpush3.bf16.msra.mxu0 %v847_v22  ;;  %572 = vperm.xlu1 %906, %v558_v33  }
  0x12   :  { %868 = vmatprep.subr.msk.bf16.mxu0 %vm867_vm12, %v955_v20  ;;  %862 = vmatpush3.bf16.msk.msra.mxu1 %vm859_vm11, %v955_v20  ;;  %vm246_vm11 = vcmp.eq.s32.totalorder %v1032_v11, %v654_v28 }
  0x13   :  { %864 = vmatprep.subr.msk.bf16.mxu1 %vm863_vm6, %v955_v20 }
  0x14   :  { %764 = vmatmul.mubr.msk.f32.vlgmr.msra.gmra.mrb[0].mxu0 %vm40_vm0, %v29_v23 }
  0x15   :  { %766 = vmatprep.mubr.msk.f32.mxu0 %vm40_vm0, %v30_v24  ;;  %870 = vmatpush3.bf16.msk.msra.mxu0 %vm867_vm12, %v955_v20  ;;  %vm1105_vm12 = vmpackc.low %vm246_vm11, %vm245_vm10 }
  0x16   :  { %872 = vmatprep.subr.msk.bf16.mxu0 %vm871_vm15, %v955_v20  ;;  %866 = vmatpush3.bf16.msk.msra.mxu1 %vm863_vm6, %v955_v20  ;;  %vm891_vm6 = vmpackc.low %vm250_vm5, %vm249_vm4 }
  0x17   :  { %884 = vmatprep.subr.msk.bf16.mxu1 %vm1105_vm12, %v955_v20  ;;  %577 = vperm.xlu1 %906, %v559_v34  }
  0x18   :  { %767 = vmatmul.mubr.msk.f32.gmra.mrb[2].mxu0 %vm40_vm0, %v31_v25 }
  0x19   :  { %874 = vmatpush3.bf16.msk.msra.mxu0 %vm871_vm15, %v955_v20  ;;  %vm1112_vm15 = vmpackc.low %vm252_vm14, %vm251_vm13 }
  0x1a   :  { %876 = vmatprep.subr.msk.bf16.mxu0 %vm875_vm3, %v955_v20 }
  0x1d   :  { %878 = vmatpush3.bf16.msk.msra.mxu0 %vm875_vm3, %v955_v20  ;;  %vm1130_vm3 = vmpackc.low %vm248_vm2, %vm247_vm1 }
  0x1e   :  { %880 = vmatprep.subr.msk.bf16.mxu0 %vm879_vm9, %v955_v20 }
  0x21   :  { %882 = vmatpush3.bf16.msk.msra.mxu0 %vm879_vm9, %v955_v20 }
  0xe7   :  { %v765_v37 = vpop.f32.mrb[0].mxu0 }
  0xe8   :  { %v143_v38 = vmul.f32 0.33333334, %v765_v37  ;;  %v119_v39 = vpop.f32.mrb[1].mxu0 }
  0xe9   :  { %v142_v40 = vmul.f32 0.33333334, %v119_v39 }
  0xea   :  { %v147_v41 = vadd.f32 %v143_v38, %v139_v35 }
  0xeb   :  { %v146_v43 = vadd.f32 %v142_v40, %v138_v36  ;;  %v768_v44 = vpop.f32.mrb[2].mxu0 }
  0xec   :  { %v145_v46 = vmul.f32 0.33333334, %v768_v44  ;;  %v129_v47 = vpop.f32.mrb[3].mxu0  ;;  %v151_v48 = vmul.f32 %v147_v41, %v147_v41 }
  0xed   :  { %v144_v49 = vmul.f32 0.33333334, %v129_v47  ;;  %785 = vmatprep.mubr.msk.f32.mxu1 %vm40_vm0, %v146_v43  ;;  %807 = vmatprep.mubr.msk.f32.mxu0 %vm40_vm0, %v146_v43  ;;  %v150_v51 = vmul.f32 %v146_v43, %v146_v43 }
  0xee   :  { %v149_v52 = vadd.f32 %v145_v46, %v141_v42  ;;  %786 = vmatmul.mubr.msk.f32.vlgmr.msra.gmra.mrb[0].mxu1 %vm40_vm0, %v147_v41  ;;  %808 = vmatmul.mubr.msk.f32.vlgmr.msra.gmra.mrb[4].mxu0 %vm40_vm0, %v147_v41  ;;  %v155_v53 = vsel %vm40_vm0, %v151_v48, 0.0 }
  0xef   :  { %v148_v54 = vadd.f32 %v144_v49, %v140_v45  ;;  %886 = vmatpush3.bf16.msk.msra.mxu1 %vm1105_vm12, %v955_v20  ;;  %v154_v55 = vsel %vm40_vm0, %v150_v51, 0.0 }
  0xf0   :  { %888 = vmatprep.subr.msk.bf16.mxu1 %vm1130_vm3, %v955_v20  ;;  %v153_v56 = vmul.f32 %v149_v52, %v149_v52  ;;  %v156_v57 = vadd.f32 %v155_v53, %v154_v55 }
  0xf1   :  { %788 = vmatprep.mubr.msk.f32.mxu1 %vm40_vm0, %v148_v54  ;;  %810 = vmatprep.mubr.msk.f32.mxu0 %vm40_vm0, %v148_v54  ;;  %v152_v58 = vmul.f32 %v148_v54, %v148_v54 }
  0xf2   :  { %789 = vmatmul.mubr.msk.f32.gmra.mrb[2].mxu1 %vm40_vm0, %v149_v52  ;;  %811 = vmatmul.mubr.msk.f32.gmra.mrb[6].mxu0 %vm40_vm0, %v149_v52  ;;  %v159_v60 = vsel %vm40_vm0, %v153_v56, 0.0 }
  0xf3   :  { %890 = vmatpush3.bf16.msk.msra.mxu1 %vm1130_vm3, %v955_v20  ;;  %829 = vmatprep.mubr.msk.f32.mxu1 %vm40_vm0, %v146_v43  ;;  %v157_v59 = vsel %vm40_vm0, %v152_v58, 0.0 }
  0xf4   :  { %892 = vmatprep.subr.msk.bf16.mxu1 %vm891_vm6, %v955_v20  ;;  %v158_v61 = vadd.f32 %v157_v59, %v156_v57 }
  0xf6   :  { %v160_v62 = vadd.f32 %v159_v60, %v158_v61 }
  0xf7   :  { %894 = vmatpush3.bf16.msk.msra.mxu1 %vm891_vm6, %v955_v20 }
  0xf8   :  { %161 = vadd.xlane.f32.xlu0 %v160_v62  ;;  %896 = vmatprep.subr.msk.bf16.mxu1 %vm1112_vm15, %v955_v20 }
  0xfb   :  { %898 = vmatpush3.bf16.msk.msra.mxu1 %vm1112_vm15, %v955_v20 }
  0xfe   :  { %830 = vmatmul.mubr.msk.f32.vlgmr.msra.gmra.mrb[4].mxu1 %vm40_vm0, %v147_v41 }
  0xff   :  { %832 = vmatprep.mubr.msk.f32.mxu1 %vm40_vm0, %v148_v54 }
 0x102   :  { %833 = vmatmul.mubr.msk.f32.gmra.mrb[6].mxu1 %vm40_vm0, %v149_v52  ;;  %vm171_vm0 = vcmask 0  }
 0x10e   :  { %562 = vperm.xlu0 %905, %v556_v63  }
 0x185   :  { %v162_v0 = vpop.xlane.xlu0 %161 }
 0x186   :  { %v163_v1 = vrot.slane %v162_v0, 4 }
 0x188   :  { %v164_v2 = vadd.f32 %v163_v1, %v162_v0 }
 0x18a   :  { %v165_v3 = vrot.slane %v164_v2, 2 }
 0x18c   :  { %v166_v4 = vadd.f32 %v165_v3, %v164_v2 }
 0x18e   :  { %v167_v5 = vrot.slane %v166_v4, 1 }
 0x190   :  { %v168_v6 = vadd.f32 %v167_v5, %v166_v4 }
 0x192   :  { %899 = vpush %v168_v6 }
 0x1c1   :  { %v787_v7 = vpop.f32.mrb[0].mxu1  ;;  %v809_v8 = vpop.f32.mrb[4].mxu0 }
 0x1c2   :  { %v537_v9 = vmul.f32 %v809_v8, %v787_v7  ;;  %v347_v10 = vpop.f32.mrb[1].mxu1  ;;  %v432_v11 = vpop.f32.mrb[5].mxu0 }
 0x1c3   :  { %v536_v12 = vmul.f32 %v432_v11, %v347_v10  ;;  %s900_s5 = spop %899 }
 0x1c4   :  { %v542_v13 = vsel %vm540_vm7, %v537_v9, 0.0  ;;  %v170_v14 = vstv %s900_s5 }
 0x1c5   :  { %v541_v15 = vsel %vm540_vm7, %v536_v12, 0.0  ;;  %172 = vst.msk [vmem:[#allocation4] sm:$0x1] %vm171_vm0, %v170_v14  ;;  %v790_v16 = vpop.f32.mrb[2].mxu1  ;;  %v812_v17 = vpop.f32.mrb[6].mxu0 }
 0x1c6   :  { %v543_v18 = vadd.f32 %v542_v13, %v541_v15  ;;  %v539_v19 = vmul.f32 %v812_v17, %v790_v16  ;;  %v357_v20 = vpop.f32.mrb[3].mxu1  ;;  %v442_v21 = vpop.f32.mrb[7].mxu0 }
 0x1c7   :  { %918 = shalt.err (!%p915_p4)
}
 0x1c8   :  { %s919_s22 = scalar_lea.hbm %s1213_s8, 16 }
 0x1c9   :  { %p920_p5 = scmp.ne.s32.totalorder %s1213_s8, %s919_s22  ;;  %p923_p6 = scmp.lt.u32.totalorder %s919_s22, %s1213_s8 }
 0x1cb   :  { %p925_p7 = pnand %p923_p6, %p920_p5 }
 0x1cd   :  { %928 = shalt.err (!%p925_p7)
}
 0x1ce   :  { %621 = dma.vmem_to_hbm [thread:$0]  %s619_s17, 16, %s1213_s8, [#allocation5]   ;;  %v538_v22 = vmul.f32 %v442_v21, %v357_v20  ;;  %v546_v23 = vsel %vm540_vm7, %v539_v19, 0.0  ;;  %v568_v26 = vpop.permute.xlu1 %567  ;;  %v563_v31 = vpop.permute.xlu0 %562  ;;  %vm584_vm8 = vcmask 15360   ;;  %vm554_vm9 = vcmask 57344  }
 0x1cf   :  { %s958_s27 = smov [#allocation2]   ;;  %vm598_vm10 = vcmask 8192  }
 0x1d0   :  { %v544_v24 = vsel %vm540_vm7, %v538_v22, 0.0  ;;  %s608_s28 = sshll.u32 %s958_s27, 4  ;;  %s609_s28 = int_to_ptr.vmem [resolvable:$true] %s608_s28 }
 0x1d1   :  { %v545_v25 = vadd.f32 %v544_v24, %v543_v18  ;;  %v831_v32 = vpop.f32.mrb[4].mxu1  ;;  %s929_s29 = scalar_lea.vmem %s609_s28, 16  ;;  %s933_s4 = scalar_lea.vmem %s609_s28, 32 }
 0x1d2   :  { %v573_v30 = vpop.permute.xlu1 %572  ;;  %v581_v34 = vmul.f32 %v831_v32, %v568_v26  ;;  %v517_v35 = vpop.f32.mrb[5].mxu1  ;;  %p930_p8 = scmp.ne.s32.totalorder %s609_s28, %s929_s29  ;;  %p934_p9 = scmp.lt.s32.totalorder %s609_s28, %s609_s28 }
 0x1d3   :  { %v547_v27 = vadd.f32 %v546_v23, %v545_v25  ;;  %v580_v36 = vmul.f32 %v563_v31, %v517_v35  ;;  %p935_p10 = scmp.lt.s32.totalorder %s933_s4, %s929_s29 }
 0x1d4   :  { %v586_v38 = vsel %vm584_vm8, %v581_v34, 0.0 }
 0x1d5   :  { %v548_v28 = vrot.slane %v547_v27, 4  ;;  %v585_v39 = vsel %vm584_vm8, %v580_v36, 0.0  ;;  %v834_v40 = vpop.f32.mrb[6].mxu1  ;;  %p936_p11 = por %p935_p10, %p934_p9 }
 0x1d6   :  { %v578_v42 = vpop.permute.xlu1 %577  ;;  %v587_v43 = vadd.f32 %v586_v38, %v585_v39  ;;  %v527_v44 = vpop.f32.mrb[7].mxu1 }
 0x1d7   :  { %v549_v29 = vadd.f32 %v548_v28, %v547_v27  ;;  %v583_v45 = vmul.f32 %v834_v40, %v578_v42  ;;  %v582_v46 = vmul.f32 %v573_v30, %v527_v44  ;;  %p937_p12 = pnand %p936_p11, %p930_p8 }
 0x1d9   :  { %v550_v33 = vrot.slane %v549_v29, 2  ;;  %v588_v48 = vsel %vm584_vm8, %v582_v46, 0.0  ;;  %v590_v50 = vsel %vm584_vm8, %v583_v45, 0.0 }
 0x1da   :  { %v589_v49 = vadd.f32 %v588_v48, %v587_v43 }
 0x1db   :  { %v551_v37 = vadd.f32 %v550_v33, %v549_v29 }
 0x1dc   :  { %v591_v51 = vadd.f32 %v590_v50, %v589_v49 }
 0x1dd   :  { %v552_v41 = vrot.slane %v551_v37, 1 }
 0x1de   :  { %v592_v52 = vrot.slane %v591_v51, 4 }
 0x1df   :  { %v553_v47 = vadd.f32 %v552_v41, %v551_v37 }
 0x1e0   :  { %v593_v53 = vadd.f32 %v592_v52, %v591_v51 }
 0x1e1   :  { %555 = vst.msk [vmem:[%s1211_s6] sm:$0x1] %vm554_vm9, %v553_v47 }
 0x1e2   :  { %v594_v54 = vrot.slane %v593_v53, 2 }
 0x1e4   :  { %v595_v55 = vadd.f32 %v594_v54, %v593_v53 }
 0x1e6   :  { %v596_v56 = vrot.slane %v595_v55, 1 }
 0x1e8   :  { %v597_v57 = vadd.f32 %v596_v56, %v595_v55 }
 0x1ea   :  { %599 = vst.msk [vmem:[#allocation2] sm:$0x1] %vm598_vm10, %v597_v57 }
 0x1eb   :  { %940 = shalt.err (!%p937_p12)
}
 0x1ec   :  { %s941_s0 = scalar_lea.hbm %s1212_s7, 16 }
 0x1ed   :  { %p942_p13 = scmp.ne.s32.totalorder %s1212_s7, %s941_s0  ;;  %p945_p0 = scmp.lt.u32.totalorder %s941_s0, %s1212_s7 }
 0x1ef   :  { %p947_p1 = pnand %p945_p0, %p942_p13 }
 0x1f1   :  { %950 = shalt.err (!%p947_p1)
}
 0x1f2   :  { %611 = dma.vmem_to_hbm [thread:$0]  %s609_s28, 16, %s1212_s7, [#allocation3]  }
 0x1f3   :  { %951 = dma.done.wait [#allocation3], 16  }
 0x1f4   :  { %952 = vsyncadd [#allocation3], 4294967280 }
 0x1f5   :  { %953 = dma.done.wait [#allocation5], 16  }
 0x1f6   :  { %954 = vsyncadd [#allocation5], 4294967280 }
 0x1f7   :  { %630 = vsyncpa [#allocation3], 1 }
 0x1f8   :  { %631 = vsyncpa [#allocation5], 1 }

</bundles_post_ra>
